<compile_context>
chip_gen: v7x
topology: tpu7x:2x2x1
jax: 0.10.0
libtpu: 0.0.40
codegen_flags: <defaults>
</compile_context>

<pallas_src>
import functools
import math

import jax
import jax.numpy as jnp
from jax.experimental import pallas as pl
from jax.experimental.pallas import tpu as pltpu


def _mlp_kernel(x_ref, w1_ref, b1_ref, w2_ref, b2_ref, o_ref, *, chunks):
    # x_ref:  (TM, C_in)   row tile of tokens (pipelined / double-buffered)
    # w1_ref: (C_in, H)    fc1 weight, whole, resident in VMEM
    # b1_ref: (1, H)       fc1 bias
    # w2_ref: (H, C_out)   fc2 weight, whole, resident in VMEM
    # b2_ref: (1, C_out)   fc2 bias
    # o_ref:  (TM, C_out)
    # chunks: static (start, stop) ranges over H; keeps the f32 intermediate
    #         at (TM, chunk) instead of (TM, H).
    tm = x_ref.shape[0]
    c_out = o_ref.shape[1]

    # Feed the MXU in the fc1 weight dtype (bf16xbf16 fast path when the
    # weights are bf16); accumulate in f32.
    x = x_ref[...].astype(w1_ref.dtype)

    inv_sqrt2 = 1.0 / math.sqrt(2.0)
    # Start the f32 accumulator from the fc2 bias (broadcast hoisted out of
    # the chunk loop).
    acc = jnp.broadcast_to(b2_ref[...].astype(jnp.float32), (tm, c_out))

    for j0, j1 in chunks:
        # fc1 partial: MXU matmul with f32 accumulation; bias added in f32.
        h = jnp.dot(x, w1_ref[:, j0:j1], preferred_element_type=jnp.float32)
        h = h + b1_ref[:, j0:j1].astype(jnp.float32)
        # Exact (erf-based) GELU in f32 — matches nn.GELU() approximate='none'.
        h = 0.5 * h * (1.0 + jax.lax.erf(h * inv_sqrt2))
        # TODO(synk): dropout with p>0 would need pltpu.prng_seed/prng_random_bits;
        # module default drop=0.0 (and eval mode) makes drop1/drop2 the identity.
        # fc2 partial: cast activation to the fc2 weight dtype, accumulate f32.
        acc = acc + jnp.dot(h.astype(w2_ref.dtype), w2_ref[j0:j1, :],
                            preferred_element_type=jnp.float32)

    o_ref[...] = acc.astype(o_ref.dtype)


def _round_up(x, m):
    return (x + m - 1) // m * m


def mlp_pallas(x, w1, b1, w2, b2, *, row_tile=512, h_chunk=512,
               compute_dtype=None):
    """x: (B, N, C_in). w1: (C_in, H), b1: (H,), w2: (H, C_out), b2: (C_out,).

    compute_dtype: optionally cast x / w1 / w2 once in the wrapper (e.g. to
    bf16) so both matmuls use the fast MXU path; accumulation stays f32.
    """
    B, N, C_in = x.shape
    H = w1.shape[1]
    C_out = w2.shape[1]
    M = B * N
    out_dtype = x.dtype

    x2d = x.reshape(M, C_in)
    if compute_dtype is not None:
        x2d = x2d.astype(compute_dtype)
        w1 = w1.astype(compute_dtype)
        w2 = w2.astype(compute_dtype)
    b1_2d = b1.reshape(1, H)
    b2_2d = b2.reshape(1, C_out)

    # Sublane alignment: 8 rows for 4-byte dtypes, 16 for 2-byte (bf16).
    sublane = 16 if x2d.dtype.itemsize == 2 else 8
    # Shrink the row tile so small inputs still get >=2 grid steps (the
    # 'parallel' axis can then shard across both v7x TensorCores) while
    # staying sublane-aligned; large inputs keep the full 512-row tile.
    rt = max(sublane, min(row_tile, _round_up(pl.cdiv(M, 2), sublane)))
    grid = (pl.cdiv(M, rt),)
    # No wrapper-side pad / slice: the (possibly partial) last block is
    # handled by Pallas — out-of-bounds rows are don't-care on read and
    # masked on store, and each output row depends only on its own input row.

    # Static H chunking (single chunk when H <= h_chunk).
    chunks = tuple((j, min(j + h_chunk, H)) for j in range(0, H, h_chunk))
    h_eff = min(h_chunk, H)

    # Whole-array, single-copy VMEM residency for the grid-invariant operands
    # (weights + biases): no double-buffering, no per-step DMA.
    resident_vmem = pl.BlockSpec(memory_space=pltpu.MemorySpace.VMEM)

    itm_x = x2d.dtype.itemsize
    itm_o = jnp.dtype(out_dtype).itemsize
    weights_bytes = (w1.size * w1.dtype.itemsize
                     + b1_2d.size * b1_2d.dtype.itemsize
                     + w2.size * w2.dtype.itemsize
                     + b2_2d.size * b2_2d.dtype.itemsize)

    # Advisory cost estimate (transcendentals counts erf calls; the lowering
    # may expand each into a few EUP/VALU ops — advisory only).
    cost = pl.CostEstimate(
        flops=2 * M * (C_in * H + H * C_out),
        transcendentals=M * H,
        bytes_accessed=int(x2d.size * itm_x + weights_bytes
                           + M * C_out * itm_o))

    # VMEM budget: resident weights + double-buffered x/out tiles + per-chunk
    # f32 intermediates.  Capped at ~85% of this chip's VMEM (compiler
    # headroom on v7x's 64 MiB per-TC VMEM; full 128 MiB usable on v5e/v6e).
    vmem_est = (weights_bytes
                + 2 * rt * C_in * itm_x          # double-buffered x tiles
                + 2 * rt * C_out * itm_o         # double-buffered out tiles
                + rt * h_eff * 4                 # f32 hidden chunk
                + rt * h_eff * itm_x             # cast copy feeding fc2
                + rt * C_out * 4)                # f32 accumulator
    try:
        vmem_cap = int(0.85 * pltpu.get_tpu_info().vmem_capacity_bytes)
    except Exception:
        vmem_cap = 100 * 1024 * 1024
    vmem_limit = int(min(max(int(vmem_est * 1.5), 32 * 1024 * 1024), vmem_cap))
    # NOTE: if the weights alone exceed the cap (very large f32 MLPs on v7x),
    # pass compute_dtype=jnp.bfloat16 or stream the weights with blocked specs.

    kernel = functools.partial(_mlp_kernel, chunks=chunks)

    out2d = pl.pallas_call(
        kernel,
        out_shape=jax.ShapeDtypeStruct((M, C_out), out_dtype),
        grid_spec=pltpu.PrefetchScalarGridSpec(
            num_scalar_prefetch=0,
            grid=grid,
            in_specs=[
                pl.BlockSpec((rt, C_in), lambda i: (i, 0)),  # x row tile
                resident_vmem,                               # w1 (whole)
                resident_vmem,                               # b1
                resident_vmem,                               # w2 (whole)
                resident_vmem,                               # b2
            ],
            # NOTE: if out_features is far below 128 lanes the stores are
            # masked (vst.msk); padding channels would make them lane-dense
            # at the price of an extra output slice copy — intentionally not
            # done here to avoid reintroducing that HBM pass.
            out_specs=pl.BlockSpec((rt, C_out), lambda i: (i, 0)),
        ),
        compiler_params=pltpu.CompilerParams(
            dimension_semantics=("parallel",),
            vmem_limit_bytes=vmem_limit),
        cost_estimate=cost,
    )(x2d, w1, b1_2d, w2, b2_2d)

    return out2d.reshape(B, N, C_out)


def mlp_reference(x, w1, b1, w2, b2):
    h = jnp.dot(x, w1) + b1
    h = jax.nn.gelu(h, approximate=False)
    return jnp.dot(h, w2) + b2


if __name__ == "__main__":
    key = jax.random.PRNGKey(0)

    # Small shapes consistent with the module: tokens of dim in_features,
    # hidden_features expansion, out_features == in_features (module default).
    in_features = 32
    hidden_features = 64
    out_features = in_features

    kx, kw1, kb1, kw2, kb2, kx2 = jax.random.split(key, 6)

    # PyTorch Linear weight is (out, in); we store the transposed (in, out)
    # layout the kernel consumes.
    w1 = jax.random.normal(kw1, (in_features, hidden_features), jnp.float32) * 0.05
    b1 = jax.random.normal(kb1, (hidden_features,), jnp.float32) * 0.05
    w2 = jax.random.normal(kw2, (hidden_features, out_features), jnp.float32) * 0.05
    b2 = jax.random.normal(kb2, (out_features,), jnp.float32) * 0.05

    # Case 1: tiny token count (exercises tile clamping + 2-step grid).
    B, N = 2, 8
    x = jax.random.normal(kx, (B, N, in_features), dtype=jnp.float32)
    y = jax.block_until_ready(mlp_pallas(x, w1, b1, w2, b2))
    y_ref = mlp_reference(x, w1, b1, w2, b2)
    assert y.shape == (B, N, out_features)
    assert jnp.allclose(y, y_ref, atol=2e-5, rtol=2e-5), "mismatch vs reference (case 1)"

    # Case 2: ragged token count (masked partial last block, no wrapper pad/slice).
    B2, N2 = 2, 197
    x2 = jax.random.normal(kx2, (B2, N2, in_features), dtype=jnp.float32)
    y2 = jax.block_until_ready(mlp_pallas(x2, w1, b1, w2, b2))
    y2_ref = mlp_reference(x2, w1, b1, w2, b2)
    assert y2.shape == (B2, N2, out_features)
    assert jnp.allclose(y2, y2_ref, atol=2e-5, rtol=2e-5), "mismatch vs reference (case 2)"

    # Case 3: mixed-precision fast path (bf16 MXU operands, f32 accumulation).
    y3 = jax.block_until_ready(
        mlp_pallas(x2, w1, b1, w2, b2, compute_dtype=jnp.bfloat16))
    assert y3.shape == (B2, N2, out_features)
    assert jnp.allclose(y3.astype(jnp.float32), y2_ref, atol=5e-2, rtol=5e-2), \
        "mismatch vs reference (case 3, bf16)"

    print("KERNEL_OK")
</pallas_src>

<mosaic_0001>
module attributes {stable_mosaic.version = 11 : i64} {
  func.func @_mlp_kernel(%arg0: i32, %arg1: memref<8x32xf32, #tpu.memory_space<vmem>>, %arg2: memref<32x64xf32, #tpu.memory_space<vmem>>, %arg3: memref<1x64xf32, #tpu.memory_space<vmem>>, %arg4: memref<64x32xf32, #tpu.memory_space<vmem>>, %arg5: memref<1x32xf32, #tpu.memory_space<vmem>>, %arg6: memref<8x32xf32, #tpu.memory_space<vmem>>) attributes {dimension_semantics = [#tpu.dimension_semantics<parallel>], iteration_bounds = array<i64: 2>, scalar_prefetch = 0 : i64, scratch_operands = 0 : i64, tpu.core_type = #tpu.core_type<tc>, window_params = [{transform_indices = @transform_0, window_bounds = array<i64: 8, 32>}, {pipeline_mode = #tpu.pipeline_mode<synchronous>, transform_indices = @transform_1, window_bounds = array<i64: 32, 64>}, {pipeline_mode = #tpu.pipeline_mode<synchronous>, transform_indices = @transform_2, window_bounds = array<i64: 1, 64>}, {pipeline_mode = #tpu.pipeline_mode<synchronous>, transform_indices = @transform_3, window_bounds = array<i64: 64, 32>}, {pipeline_mode = #tpu.pipeline_mode<synchronous>, transform_indices = @transform_4, window_bounds = array<i64: 1, 32>}, {transform_indices = @transform_5, window_bounds = array<i64: 8, 32>}]} {
    %c0 = arith.constant 0 : index
    %c0_0 = arith.constant 0 : index
    %0 = vector.load %arg1[%c0, %c0_0] : memref<8x32xf32, #tpu.memory_space<vmem>>, vector<8x32xf32>
    %c0_1 = arith.constant 0 : index
    %c0_2 = arith.constant 0 : index
    %1 = vector.load %arg5[%c0_1, %c0_2] : memref<1x32xf32, #tpu.memory_space<vmem>>, vector<1x32xf32>
    %2 = vector.shape_cast %1 : vector<1x32xf32> to vector<1x32xf32>
    %3 = vector.broadcast %2 : vector<1x32xf32> to vector<8x32xf32>
    %c0_3 = arith.constant 0 : index
    %c0_4 = arith.constant 0 : index
    %4 = vector.load %arg2[%c0_3, %c0_4] : memref<32x64xf32, #tpu.memory_space<vmem>>, vector<32x64xf32>
    %cst = arith.constant dense<0.000000e+00> : vector<8x64xf32>
    %5 = tpu.matmul %0, %4, %cst {dimension_numbers = #tpu.dot_dimension_numbers<[1], [0], [0], [1], [0, 0, 1, 1], [], []>} : vector<8x32xf32>, vector<32x64xf32>, vector<8x64xf32> -> vector<8x64xf32>
    %c0_5 = arith.constant 0 : index
    %c0_6 = arith.constant 0 : index
    %6 = vector.load %arg3[%c0_5, %c0_6] : memref<1x64xf32, #tpu.memory_space<vmem>>, vector<1x64xf32>
    %7 = vector.broadcast %6 : vector<1x64xf32> to vector<8x64xf32>
    %8 = arith.addf %5, %7 : vector<8x64xf32>
    %cst_7 = arith.constant 5.000000e-01 : f32
    %9 = vector.broadcast %cst_7 : f32 to vector<8x64xf32>
    %10 = arith.mulf %9, %8 : vector<8x64xf32>
    %cst_8 = arith.constant 0.707106769 : f32
    %11 = vector.broadcast %cst_8 : f32 to vector<8x64xf32>
    %12 = arith.mulf %8, %11 : vector<8x64xf32>
    %13 = math.erf %12 : vector<8x64xf32>
    %cst_9 = arith.constant 1.000000e+00 : f32
    %14 = vector.broadcast %cst_9 : f32 to vector<8x64xf32>
    %15 = arith.addf %14, %13 : vector<8x64xf32>
    %16 = arith.mulf %10, %15 : vector<8x64xf32>
    %c0_10 = arith.constant 0 : index
    %c0_11 = arith.constant 0 : index
    %17 = vector.load %arg4[%c0_10, %c0_11] : memref<64x32xf32, #tpu.memory_space<vmem>>, vector<64x32xf32>
    %cst_12 = arith.constant dense<0.000000e+00> : vector<8x32xf32>
    %18 = tpu.matmul %16, %17, %cst_12 {dimension_numbers = #tpu.dot_dimension_numbers<[1], [0], [0], [1], [0, 0, 1, 1], [], []>} : vector<8x64xf32>, vector<64x32xf32>, vector<8x32xf32> -> vector<8x32xf32>
    %19 = arith.addf %3, %18 : vector<8x32xf32>
    %c0_13 = arith.constant 0 : index
    %c0_14 = arith.constant 0 : index
    %20 = vector.load %arg6[%c0_13, %c0_14] : memref<8x32xf32, #tpu.memory_space<vmem>>, vector<8x32xf32>
    tpu.vector_store %arg6[%c0_13, %c0_14], %19 {strides = array<i32>} : memref<8x32xf32, #tpu.memory_space<vmem>>, vector<8x32xf32>,
    return
  }
  func.func @transform_0(%arg0: i32) -> (i32, i32) {
    %c0_i32 = arith.constant 0 : i32
    %c0_i32_0 = arith.constant 0 : i32
    return %arg0, %c0_i32 : i32, i32
  }
  func.func @transform_1(%arg0: i32) -> (i32, i32) {
    %c0_i32 = arith.constant 0 : i32
    %c0_i32_0 = arith.constant 0 : i32
    %c0_i32_1 = arith.constant 0 : i32
    return %c0_i32, %c0_i32_0 : i32, i32
  }
  func.func @transform_2(%arg0: i32) -> (i32, i32) {
    %c0_i32 = arith.constant 0 : i32
    %c0_i32_0 = arith.constant 0 : i32
    %c0_i32_1 = arith.constant 0 : i32
    return %c0_i32, %c0_i32_0 : i32, i32
  }
  func.func @transform_3(%arg0: i32) -> (i32, i32) {
    %c0_i32 = arith.constant 0 : i32
    %c0_i32_0 = arith.constant 0 : i32
    %c0_i32_1 = arith.constant 0 : i32
    return %c0_i32, %c0_i32_0 : i32, i32
  }
  func.func @transform_4(%arg0: i32) -> (i32, i32) {
    %c0_i32 = arith.constant 0 : i32
    %c0_i32_0 = arith.constant 0 : i32
    %c0_i32_1 = arith.constant 0 : i32
    return %c0_i32, %c0_i32_0 : i32, i32
  }
  func.func @transform_5(%arg0: i32) -> (i32, i32) {
    %c0_i32 = arith.constant 0 : i32
    %c0_i32_0 = arith.constant 0 : i32
    return %arg0, %c0_i32 : i32, i32
  }
}

</mosaic_0001>

<bundles_post_ra>
// kernel: tpu_custom_call.1
= control target key start
LH: loop header
LB: loop body
LE: loop exit
PB: predicated region body
PF: predicated region fallthrough
CT: control target
= control target key end

     0   :  { %10 = vsyncpa [#allocation3], 0  ;;  %s837_s0 = inlined_call_operand.vmem [shape: f32[16,32], index: 0, kind: input, shape index: {}]   ;;  %s838_s1 = inlined_call_operand.vmem [shape: f32[32,64], index: 1, kind: input, shape index: {}]   ;;  %s839_s2 = inlined_call_operand.vmem [shape: f32[1,64], index: 2, kind: input, shape index: {}]   ;;  %s840_s3 = inlined_call_operand.vmem [shape: f32[64,32], index: 3, kind: input, shape index: {}]   ;;  %s841_s4 = inlined_call_operand.vmem [shape: f32[1,32], index: 4, kind: input, shape index: {}]   ;;  %s842_s5 = inlined_call_operand.hbm [shape: f32[16,32], index: 5, kind: output, shape index: {}]  }
   0x1   :  { %12 = vsyncpa [#allocation3 + $0x1], 0  ;;  %s693_s18 = smov 0   ;;  %s695_s19 = smov 0  }
   0x2   :  { %s697_s20 = smov 0   ;;  %s699_s21 = smov 0  }
   0x3 LB: > { %s714_s22 = sadd.s32 4294967295, %s657_s21   ;;  %s475_s23 = sadd.s32 4294967294, %s657_s21   ;;  %s657_s21 = sphi %s699_s21, %s848_s21   ;;  %s653_s20 = sphi %s697_s20, %s847_s20   ;;  %s649_s19 = sphi %s695_s19, %s846_s19   ;;  %s645_s18 = sphi %s693_s18, %s845_s18  }
   0x4   : > { %s718_s24 = sadd.s32 1, %s657_s21   ;;  %s135_s25 = sadd.s32 1, %s653_s20 }
   0x5   : > { %s132_s26 = ssub.s32 %s657_s21, %s718_s24  ;;  %p145_p0 = scmp.ne.s32.totalorder %s653_s20, %s649_s19 }
   0x6   : > { %p133_p1 = scmp.eq.s32.totalorder %s132_s26, 0  ;;  %p146_p2 = scmp.eq.s32.totalorder %s714_s22, 1 }
   0x7   : > { %p151_p3 = scmp.ne.s32.totalorder %s649_s19, %s645_s18  ;;  %p152_p4 = scmp.eq.s32.totalorder %s475_s23, 1 }
   0x8   : > { %s729_s27 = scalar_select %p133_p1, %s653_s20, %s135_s25  }
   0x9   : > { %p731_p5 = por %p146_p2, %p145_p0  ;;  %p735_p6 = por %p152_p4, %p151_p3 }
   0xa   : > { %p478_p7 = scmp.ge.s32.totalorder %s657_s21, 1  ;;  %p189_p8 = scmp.lt.s32.totalorder %s657_s21, 3 }
   0xc   : > { %p190_p9 = pnand %p478_p7, %p189_p8 }
   0xd   : > { %v228_v0 = vld [vmem:[%s838_s1] sm:$0xff] (!%p190_p9)  ;;  %v229_v1 = vld [vmem:[%s838_s1 + $0x8] sm:$0xff] (!%p190_p9)  ;;  %v230_v2 = vld [vmem:[%s838_s1 + $0x10] sm:$0xff] (!%p190_p9)  ;;  %v659_v3 = vmov (!%p190_p9), 0.0|0.0   ;;  %vm660_vm0 = vmmov (!%p190_p9), 0   ;;  %v661_v6 = vmov (!%p190_p9), 0.0  }
   0xe   : > { %193 = sbr.rel (%p190_p9) target bundleno = 485 (0x1e5), region = 40  ;;  %533 = vmatprep.subr.bf16.mxu0 (!%p190_p9), %v659_v3  ;;  %v534_v4 = vpack.c.bf16 (!%p190_p9), %v229_v1, %v228_v0  ;;  %v231_v5 = vld [vmem:[%s838_s1 + $0x18] sm:$0xff] (!%p190_p9)  ;;  %511 = vmatprep.mubr.msk.f32.mxu0 (!%p190_p9), %vm660_vm0, %v661_v6  ;;  %p216_p10 = scmp.lt.s32.totalorder (!%p190_p9), %s714_s22, 1  ;;  %vm239_vm1 = vcmask (!%p190_p9), 261120   ;;  %v318_v9 = vld [vmem:[%s840_s3] sm:$0xff] (!%p190_p9)  ;;  %v319_v10 = vld [vmem:[%s840_s3 + $0x8] sm:$0xff] (!%p190_p9) }
   0xf   : > { %539 = vmatprep.subr.bf16.mxu1 (!%p190_p9), %v659_v3  ;;  %530 = vmatprep.mubr.msk.f32.mxu1 (!%p190_p9), %vm660_vm0, %v661_v6  ;;  %v537_v7 = vpack.c.bf16 (!%p190_p9), %v231_v5, %v230_v2  ;;  %v540_v11 = vpack.c.bf16 (!%p190_p9), %v319_v10, %v318_v9  ;;  %v320_v12 = vld [vmem:[%s840_s3 + $0x10] sm:$0xff] (!%p190_p9)  ;;  %v321_v13 = vld [vmem:[%s840_s3 + $0x18] sm:$0xff] (!%p190_p9)  ;;  %v322_v15 = vld [vmem:[%s840_s3 + $0x20] sm:$0xff] (!%p190_p9)  ;;  %vm326_vm2 = vcmask (!%p190_p9), 523264   ;;  %s213_s26 = sand.u32 (!%p190_p9), 1, %s649_s19   ;;  %s486_s8 = sshll.u32 (!%p190_p9), %s714_s22, 7 }
  0x10   : > { %535 = vmatpush3.bf16.msra.mxu0 (!%p190_p9), %v534_v4  ;;  %v543_v14 = vpack.c.bf16 (!%p190_p9), %v321_v13, %v320_v12  ;;  %v323_v16 = vld [vmem:[%s840_s3 + $0x28] sm:$0xff] (!%p190_p9)  ;;  %v324_v18 = vld [vmem:[%s840_s3 + $0x30] sm:$0xff] (!%p190_p9)  ;;  %v325_v19 = vld [vmem:[%s840_s3 + $0x38] sm:$0xff] (!%p190_p9)  ;;  %s479_s30 = sshll.u32 (!%p190_p9), %s213_s26, 3 }
  0x11   : > { %536 = vmatprep.subr.bf16.mxu0 (!%p190_p9), %v659_v3  ;;  %541 = vmatpush3.bf16.msra.mxu1 (!%p190_p9), %v540_v11  ;;  %v546_v17 = vpack.c.bf16 (!%p190_p9), %v323_v16, %v322_v15  ;;  %v549_v20 = vpack.c.bf16 (!%p190_p9), %v325_v19, %v324_v18  ;;  %v482_v21 = vld [vmem:[%s839_s2] ss:$0 sm:$0xff] (!%p190_p9)  ;;  %s215_s9 = scalar_lea.vmem (!%p190_p9), [#allocation2], %s479_s30 }
  0x12   : > { %542 = vmatprep.subr.bf16.mxu1 (!%p190_p9), %v659_v3  ;;  %v481_v30 = vld [vmem:[%s841_s4] ss:$0 sm:$0xff] (!%p190_p9)  ;;  %s416_s10 = sshll.u32 (!%p190_p9), %s215_s9, 4  ;;  %s796_s10 = int_to_ptr.vmem [resolvable:$true] %s416_s10 }
  0x13   : > { %s595_s15 = scalar_lea.vmem (!%p190_p9), %s796_s10, 128 }
  0x14   : > { %538 = vmatpush3.bf16.msra.mxu0 (!%p190_p9), %v537_v7  ;;  %p596_p11 = scmp.ne.s32.totalorder (!%p190_p9), %s796_s10, %s595_s15 }
  0x15   : > { %s217_s13 = scalar_select %p216_p10, %s714_s22, 1  ;;  %544 = vmatpush3.bf16.msra.mxu1 %v543_v14 }
  0x16   : > { %545 = vmatprep.subr.bf16.mxu1 %v659_v3  ;;  %p597_p12 = pnand %p596_p11, %p731_p5  ;;  %s662_s22 = smov [#allocation2]  }
  0x17   : > { %s480_s14 = sshll.u32 %s217_s13, 3  ;;  %s794_s13 = scalar_lea.hbm %s842_s5, %s486_s8 }
  0x18   : > { %s219_s17 = scalar_lea.vmem %s837_s0, %s480_s14  ;;  %s403_s14 = scalar_lea.sflag [#allocation3], %s213_s26 }
  0x19   : > { %v220_v8 = vld [vmem:[%s219_s17] sm:$0xff]  ;;  %547 = vmatpush3.bf16.msra.mxu1 %v546_v17  ;;  %p598_p13 = pneg %p597_p12  ;;  %s599_s16 = sshll.u32 %s662_s22, 4  ;;  %s600_s16 = int_to_ptr.vmem [resolvable:$false] %s599_s16 }
  0x1a   : > { %512 = vmatmul.mubr.msk.f32.vlgmr.msra.gmra.mrb[0].mxu0 %vm239_vm1, %v220_v8  ;;  %548 = vmatprep.subr.bf16.mxu1 %v659_v3  ;;  %s601_s17 = scalar_lea.vmem %s600_s16, 256  ;;  %p602_p0 = scmp.lt.s32.totalorder %s796_s10, %s600_s16 }
  0x1b   : > { %p603_p1 = scmp.lt.s32.totalorder %s601_s17, %s595_s15 }
  0x1d   : > { %550 = vmatpush3.bf16.msra.mxu1 %v549_v20  ;;  %p604_p2 = por %p603_p1, %p602_p0 }
  0x1f   : > { %p605_p3 = pnand %p604_p2, %p598_p13 }
  0xed   : > { %v309_v22 = vpop.f32.mrb[0].mxu0 }
  0xee   : > { %v310_v23 = vadd.f32 %v482_v21, %v309_v22  ;;  %v513_v24 = vpop.f32.mrb[1].mxu0 }
  0xf0   : > { %v314_v25 = vmul.f32 0.70710677, %v310_v23  ;;  %v313_v27 = vmul.f32 0.5, %v310_v23 }
  0xf2   : > { %593 = verf.f32 %v314_v25 }
  0xfc   : > { %v594_v26 = vpop.eup %593 }
  0xfd   : > { %v316_v28 = vadd.f32 1.0, %v594_v26 }
  0xff   : > { %v317_v29 = vmul.f32 %v316_v28, %v313_v27 }
 0x101   : > { %531 = vmatmul.mubr.msk.f32.vlgmr.msra.gmra.mrb[0].mxu1 %vm326_vm2, %v317_v29 }
 0x1d4   : > { %v396_v31 = vpop.f32.mrb[0].mxu1 }
 0x1d5   : > { %v400_v32 = vadd.f32 %v481_v30, %v396_v31  ;;  %v532_v33 = vpop.f32.mrb[1].mxu1 }
 0x1d7   : > { %401 = vst.msk [vmem:[%s215_s9] sm:$0xff] %vm239_vm1, %v400_v32 }
 0x1d8   : > { %608 = shalt.err (!%p605_p3)
}
 0x1d9   : > { %s609_s23 = scalar_lea.hbm %s794_s13, 128  ;;  %s613_s30 = scalar_lea.hbm %s842_s5, 256 }
 0x1da   : > { %p610_p4 = scmp.ne.s32.totalorder %s794_s13, %s609_s23  ;;  %p614_p9 = scmp.lt.u32.totalorder %s794_s13, %s842_s5 }
 0x1db   : > { %p615_p10 = scmp.lt.u32.totalorder %s613_s30, %s609_s23  ;;  %p617_p12 = scmp.lt.u32.totalorder %s609_s23, %s794_s13 }
 0x1dc   : > { %p611_p7 = pnand %p610_p4, %p731_p5 }
 0x1dd   : > { %p616_p11 = por %p615_p10, %p614_p9 }
 0x1de   : > { %p612_p8 = pneg %p611_p7 }
 0x1df   : > { %p618_p13 = por %p617_p12, %p616_p11 }
 0x1e1   : > { %p619_p0 = pnand %p618_p13, %p612_p8 }
 0x1e3   : > { %622 = shalt.err (!%p619_p0)
}
 0x1e4   : > { %551 = dma.vmem_to_hbm [thread:$0]  (%p731_p5), %s796_s10, 128, %s794_s13, %s403_s14  }
 0x1e5 PF: > { %p557_p1 = scmp.ge.s32.totalorder %s657_s21, 2  ;;  %s428_s8 = sand.u32 1, %s645_s18  }
 0x1e6   : > { %s429_s9 = scalar_lea.sflag [#allocation3], %s428_s8 }
 0x1e7   : > { %p554_p2 = pnand %p557_p1, %p735_p6 }
 0x1e9   : > { %640 = dma.done.wait (!%p554_p2), %s429_s9, 128  }
 0x1ea   : > { %642 = vsyncadd (!%p554_p2), %s429_s9, 4294967168  ;;  %p15_p3 = scmp.ge.s32.totalorder %s718_s24, 4   ;;  %s845_s18 = smov %s649_s19 }
 0x1eb   : > { %s846_s19 = smov %s653_s20  ;;  %s847_s20 = smov %s729_s27 }
 0x1ec   : > { %s848_s21 = smov %s718_s24  ;;  %17 = sbr.rel (!%p15_p3) target bundleno = 3 (0x3), region = 75 }
 0x1f3   :  { %434 = vsyncpa [#allocation3], 1 }
 0x1f4   :  { %436 = vsyncpa [#allocation3 + $0x1], 1 }

</bundles_post_ra>
